<compile_context>
chip_gen: v7x
topology: tpu7x:2x2x1
jax: 0.10.0
libtpu: 0.0.40
codegen_flags: <defaults>
</compile_context>

<pallas_src>
import jax
import jax.numpy as jnp
from jax.experimental import pallas as pl
from jax.experimental.pallas import tpu as pltpu


def _round_up(x, m):
    return ((x + m - 1) // m) * m


def _choose_tile(dim, max_tile, align):
    """Padding-aware tile choice.

    * dim <= max_tile -> use the full extent (always a legal block, zero pad).
    * otherwise       -> largest align-multiple in (max_tile/2, max_tile]
                         minimizing round_up(dim, tile) - dim.
    """
    if dim <= max_tile:
        return dim
    best_c, best_waste = max_tile, (-dim) % max_tile
    c = max_tile - align
    while 2 * c > max_tile:
        waste = (-dim) % c
        if waste < best_waste:
            best_c, best_waste = c, waste
        c -= align
    return best_c


def _linear_relu_kernel(x_ref, w_ref, b_ref, o_ref):
    # x_ref: (bm, tk)   activation tile
    # w_ref: (tk, tn)   weight tile, (in, out) layout -> reduction dim leading
    # b_ref: (1,  tn)   bias tile
    # o_ref: (bm, tn)   f32 output tile == accumulator (resident across K axis)
    k = pl.program_id(2)

    @pl.when(k == 0)
    def _():
        o_ref[...] = jnp.zeros_like(o_ref)

    # (bm, tk) @ (tk, tn) on the MXU with f32 accumulation; no RHS transpose.
    o_ref[...] += jnp.dot(x_ref[...], w_ref[...],
                          preferred_element_type=jnp.float32)

    @pl.when(k == pl.num_programs(2) - 1)
    def _():
        # hidden_activation == ReLU
        o_ref[...] = jnp.maximum(o_ref[...] + b_ref[...], 0.0)


def activation_layer(x, weight, bias, *, bm=None, tn=None, tk=None,
                     compute_dtype=None):
    """Forward pass of ActivationLayer: relu(x @ weight.T + bias).

    x:      (batch, input_dim)       float32
    weight: (output_dim, input_dim)  PyTorch nn.Linear convention
    bias:   (output_dim,)
    compute_dtype: optional (e.g. jnp.bfloat16) MXU-input dtype; accumulation
                   and output stay float32.  None keeps exact f32 numerics.
    returns (batch, output_dim) float32
    """
    batch, input_dim = x.shape
    output_dim, k_dim = weight.shape
    assert k_dim == input_dim and bias.shape == (output_dim,)

    # ---- Tile selection (padding-aware, MXU/lane aligned) -------------------
    if bm is None:
        bm = _choose_tile(batch, 512, 8)          # sublane axis: multiples of 8
    if tn is None:
        tn = _choose_tile(output_dim, 512, 128)   # lane axis: multiples of 128
    if tk is None:
        tk = _choose_tile(input_dim, 1024, 128)

    Bp = _round_up(batch, bm)
    Np = _round_up(output_dim, tn)
    Kp = _round_up(input_dim, tk)

    # v7x has two TensorCores: if everything fits in one (bm, tn) block, split a
    # parallel axis in two (when alignment still holds) so both cores get work.
    if Bp // bm == 1 and Np // tn == 1:
        if tn % 256 == 0:
            tn //= 2
        elif bm % 16 == 0:
            bm //= 2

    grid = (Bp // bm, Np // tn, Kp // tk)

    # ---- One-time parameter prep (static across calls for a fixed layer) ----
    # TODO(synk): in a real model, hoist/cache this transposed+padded weight
    # outside the per-call hot path instead of rebuilding it each call.
    w_kn = weight.T                                   # (K, N): no in-kernel transpose
    if (Kp, Np) != (input_dim, output_dim):
        w_kn = jnp.pad(w_kn, ((0, Kp - input_dim), (0, Np - output_dim)))
    b2 = bias if Np == output_dim else jnp.pad(bias, (0, Np - output_dim))
    b2 = b2.reshape(1, Np).astype(jnp.float32)

    xp = x
    if (Bp, Kp) != (batch, input_dim):                # zero K-pad is a no-op in the dot
        xp = jnp.pad(x, ((0, Bp - batch), (0, Kp - input_dim)))

    if compute_dtype is not None:
        xp = xp.astype(compute_dtype)
        w_kn = w_kn.astype(compute_dtype)

    # ---- Cost hint: actual re-streamed traffic of the (i, j, k) grid --------
    gm, gn, gk = grid
    cost = pl.CostEstimate(
        flops=2 * Bp * Kp * Np,
        transcendentals=0,
        bytes_accessed=int(gn * Bp * Kp * xp.dtype.itemsize      # x re-read per N block
                           + gm * Kp * Np * w_kn.dtype.itemsize  # weight re-read per M block
                           + gm * Np * 4                         # bias re-read per M block
                           + Bp * Np * 4),                       # output writeback
    )

    out = pl.pallas_call(
        _linear_relu_kernel,
        out_shape=jax.ShapeDtypeStruct((Bp, Np), jnp.float32),
        grid_spec=pltpu.PrefetchScalarGridSpec(
            num_scalar_prefetch=0,
            grid=grid,
            in_specs=[
                pl.BlockSpec((bm, tk), lambda i, j, k: (i, k)),   # x tile
                pl.BlockSpec((tk, tn), lambda i, j, k: (k, j)),   # weight tile
                pl.BlockSpec((1, tn), lambda i, j, k: (0, j)),    # bias tile
            ],
            out_specs=pl.BlockSpec((bm, tn), lambda i, j, k: (i, j)),
        ),
        compiler_params=pltpu.CompilerParams(
            dimension_semantics=("parallel", "parallel", "arbitrary"),
            # Worst-case per-step footprint ~10 MiB double-buffered; raise the
            # scoped limit for headroom while staying under v7x's 64 MiB.
            vmem_limit_bytes=48 << 20,
        ),
        cost_estimate=cost,
    )(xp, w_kn, b2)

    return out[:batch, :output_dim]


if __name__ == "__main__":
    key = jax.random.PRNGKey(0)

    def _check(batch, input_dim, output_dim, keys):
        kx, kw, kb = keys
        x = jax.random.normal(kx, (batch, input_dim), dtype=jnp.float32)
        # nn.Linear-style uniform init with bound 1/sqrt(fan_in).
        bound = 1.0 / jnp.sqrt(jnp.float32(input_dim))
        weight = jax.random.uniform(kw, (output_dim, input_dim),
                                    minval=-bound, maxval=bound,
                                    dtype=jnp.float32)
        bias = jax.random.uniform(kb, (output_dim,),
                                  minval=-bound, maxval=bound,
                                  dtype=jnp.float32)

        out = jax.block_until_ready(activation_layer(x, weight, bias))

        ref = jnp.maximum(
            jnp.matmul(x, weight.T, precision=jax.lax.Precision.HIGHEST) + bias,
            0.0)
        assert out.shape == (batch, output_dim)
        assert jnp.allclose(out, ref, atol=1e-4, rtol=1e-4), (
            f"mismatch vs reference at ({batch},{input_dim},{output_dim})")

    keys = jax.random.split(key, 6)
    # Small shape matching the module's forward (batch of feature vectors).
    _check(8, 32, 16, keys[:3])
    # Moderately sized, tile-aligned shape exercising the multi-block grid
    # (and the two-TensorCore split path).
    _check(256, 384, 256, keys[3:])

    print("KERNEL_OK")
</pallas_src>

<mosaic_0001>
module attributes {stable_mosaic.version = 11 : i64} {
  func.func @_linear_relu_kernel(%arg0: i32, %arg1: i32, %arg2: i32, %arg3: memref<8x32xf32, #tpu.memory_space<vmem>>, %arg4: memref<32x16xf32, #tpu.memory_space<vmem>>, %arg5: memref<1x16xf32, #tpu.memory_space<vmem>>, %arg6: memref<8x16xf32, #tpu.memory_space<vmem>>) attributes {dimension_semantics = [#tpu.dimension_semantics<parallel>, #tpu.dimension_semantics<parallel>, #tpu.dimension_semantics<arbitrary>], iteration_bounds = array<i64: 1, 1, 1>, scalar_prefetch = 0 : i64, scratch_operands = 0 : i64, tpu.core_type = #tpu.core_type<tc>, window_params = [{transform_indices = @transform_0, window_bounds = array<i64: 8, 32>}, {transform_indices = @transform_1, window_bounds = array<i64: 32, 16>}, {transform_indices = @transform_2, window_bounds = array<i64: 1, 16>}, {transform_indices = @transform_3, window_bounds = array<i64: 8, 16>}]} {
    %c0_i32 = arith.constant 0 : i32
    %0 = arith.cmpi eq, %arg2, %c0_i32 : i32
    %1 = arith.extui %0 : i1 to i32
    %c0_i32_0 = arith.constant 0 : i32
    %2 = arith.cmpi ne, %1, %c0_i32_0 : i32
    scf.if %2 {
      %cst_10 = arith.constant 0.000000e+00 : f32
      %12 = vector.broadcast %cst_10 : f32 to vector<8x16xf32>
      %c0_11 = arith.constant 0 : index
      %c0_12 = arith.constant 0 : index
      %13 = vector.load %arg6[%c0_11, %c0_12] : memref<8x16xf32, #tpu.memory_space<vmem>>, vector<8x16xf32>
      tpu.vector_store %arg6[%c0_11, %c0_12], %12 {strides = array<i32>} : memref<8x16xf32, #tpu.memory_space<vmem>>, vector<8x16xf32>,
    } else {
    }
    %c0 = arith.constant 0 : index
    %c0_1 = arith.constant 0 : index
    %3 = vector.load %arg6[%c0, %c0_1] : memref<8x16xf32, #tpu.memory_space<vmem>>, vector<8x16xf32>
    %c0_2 = arith.constant 0 : index
    %c0_3 = arith.constant 0 : index
    %4 = vector.load %arg3[%c0_2, %c0_3] : memref<8x32xf32, #tpu.memory_space<vmem>>, vector<8x32xf32>
    %c0_4 = arith.constant 0 : index
    %c0_5 = arith.constant 0 : index
    %5 = vector.load %arg4[%c0_4, %c0_5] : memref<32x16xf32, #tpu.memory_space<vmem>>, vector<32x16xf32>
    %cst = arith.constant dense<0.000000e+00> : vector<8x16xf32>
    %6 = tpu.matmul %4, %5, %cst {dimension_numbers = #tpu.dot_dimension_numbers<[1], [0], [0], [1], [0, 0, 1, 1], [], []>} : vector<8x32xf32>, vector<32x16xf32>, vector<8x16xf32> -> vector<8x16xf32>
    %7 = arith.addf %3, %6 : vector<8x16xf32>
    %c0_6 = arith.constant 0 : index
    %c0_7 = arith.constant 0 : index
    %8 = vector.load %arg6[%c0_6, %c0_7] : memref<8x16xf32, #tpu.memory_space<vmem>>, vector<8x16xf32>
    tpu.vector_store %arg6[%c0_6, %c0_7], %7 {strides = array<i32>} : memref<8x16xf32, #tpu.memory_space<vmem>>, vector<8x16xf32>,
    %c0_i32_8 = arith.constant 0 : i32
    %9 = arith.cmpi eq, %arg2, %c0_i32_8 : i32
    %10 = arith.extui %9 : i1 to i32
    %c0_i32_9 = arith.constant 0 : i32
    %11 = arith.cmpi ne, %10, %c0_i32_9 : i32
    scf.if %11 {
      %c0_10 = arith.constant 0 : index
      %c0_11 = arith.constant 0 : index
      %12 = vector.load %arg6[%c0_10, %c0_11] : memref<8x16xf32, #tpu.memory_space<vmem>>, vector<8x16xf32>
      %c0_12 = arith.constant 0 : index
      %c0_13 = arith.constant 0 : index
      %13 = vector.load %arg5[%c0_12, %c0_13] : memref<1x16xf32, #tpu.memory_space<vmem>>, vector<1x16xf32>
      %14 = vector.broadcast %13 : vector<1x16xf32> to vector<8x16xf32>
      %15 = arith.addf %12, %14 : vector<8x16xf32>
      %cst_14 = arith.constant 0.000000e+00 : f32
      %16 = vector.broadcast %cst_14 : f32 to vector<8x16xf32>
      %17 = arith.maximumf %15, %16 : vector<8x16xf32>
      %c0_15 = arith.constant 0 : index
      %c0_16 = arith.constant 0 : index
      %18 = vector.load %arg6[%c0_15, %c0_16] : memref<8x16xf32, #tpu.memory_space<vmem>>, vector<8x16xf32>
      tpu.vector_store %arg6[%c0_15, %c0_16], %17 {strides = array<i32>} : memref<8x16xf32, #tpu.memory_space<vmem>>, vector<8x16xf32>,
    } else {
    }
    return
  }
  func.func @transform_0(%arg0: i32, %arg1: i32, %arg2: i32) -> (i32, i32) {
    %c0_i32 = arith.constant 0 : i32
    return %arg0, %arg2 : i32, i32
  }
  func.func @transform_1(%arg0: i32, %arg1: i32, %arg2: i32) -> (i32, i32) {
    %c0_i32 = arith.constant 0 : i32
    return %arg2, %arg1 : i32, i32
  }
  func.func @transform_2(%arg0: i32, %arg1: i32, %arg2: i32) -> (i32, i32) {
    %c0_i32 = arith.constant 0 : i32
    %c0_i32_0 = arith.constant 0 : i32
    return %c0_i32, %arg1 : i32, i32
  }
  func.func @transform_3(%arg0: i32, %arg1: i32, %arg2: i32) -> (i32, i32) {
    %c0_i32 = arith.constant 0 : i32
    return %arg0, %arg1 : i32, i32
  }
}

</mosaic_0001>

<bundles_post_ra>
// kernel: tpu_custom_call.1
= control target key start
LH: loop header
LB: loop body
LE: loop exit
PB: predicated region body
PF: predicated region fallthrough
CT: control target
= control target key end

     0   :  { %vm19_vm0 = vcmask 130048   ;;  %v184_v3 = vmov 0.0|0.0   ;;  %v185_v6 = vmov 0.0   ;;  %s241_s0 = inlined_call_operand.vmem [shape: f32[8,32], index: 0, kind: input, shape index: {}]   ;;  %s242_s1 = inlined_call_operand.vmem [shape: f32[32,16], index: 1, kind: input, shape index: {}]   ;;  %s243_s2 = inlined_call_operand.vmem [shape: f32[1,16], index: 2, kind: input, shape index: {}]   ;;  %s244_s3 = inlined_call_operand.hbm [shape: f32[8,16], index: 3, kind: output, shape index: {}]  }
   0x1   :  { %v23_v0 = vld [vmem:[%s242_s1] sm:$0xff]  ;;  %v24_v1 = vld [vmem:[%s242_s1 + $0x8] sm:$0xff]  ;;  %v25_v2 = vld [vmem:[%s242_s1 + $0x10] sm:$0xff]  ;;  %150 = vmatprep.subr.bf16.mxu0 %v184_v3  ;;  %20 = vst.msk [vmem:[#allocation2] sm:$0xff] %vm19_vm0, %v185_v6 }
   0x2   :  { %v151_v4 = vpack.c.bf16 %v24_v1, %v23_v0  ;;  %v26_v5 = vld [vmem:[%s242_s1 + $0x18] sm:$0xff] }
   0x3   :  { %8 = vsyncpa [#allocation3], 0  ;;  %vm186_vm1 = vmmov 0   ;;  %v154_v7 = vpack.c.bf16 %v26_v5, %v25_v2  ;;  %v22_v8 = vld [vmem:[%s241_s0] sm:$0xff]  ;;  %vm27_vm2 = vcmask 261120   ;;  %s187_s23 = smov [#allocation2]  }
   0x4   :  { %147 = vmatprep.mubr.msk.f32.mxu0 %vm186_vm1, %v185_v6  ;;  %152 = vmatpush3.bf16.msra.mxu0 %v151_v4  ;;  %v133_v13 = vld [vmem:[%s243_s2] ss:$0 sm:$0xff]  ;;  %s124_s24 = sshll.u32 %s187_s23, 4  ;;  %s125_s24 = int_to_ptr.vmem [resolvable:$true] %s124_s24 }
   0x5   :  { %153 = vmatprep.subr.bf16.mxu0 %v184_v3  ;;  %s160_s0 = scalar_lea.vmem %s125_s24, 128  ;;  %p165_p1 = scmp.lt.s32.totalorder %s125_s24, %s125_s24 }
   0x6   :  { %p161_p0 = scmp.ne.s32.totalorder %s125_s24, %s160_s0  ;;  %p166_p2 = scmp.lt.s32.totalorder %s160_s0, %s160_s0 }
   0x8   :  { %155 = vmatpush3.bf16.msra.mxu0 %v154_v7  ;;  %v21_v9 = vld [vmem:[#allocation2] sm:$0xff]  ;;  %p167_p3 = por %p166_p2, %p165_p1 }
   0xa   :  { %p168_p4 = pnand %p167_p3, %p161_p0 }
   0xb   :  { %148 = vmatmul.mubr.msk.f32.vlgmr.msra.gmra.mrb[0].mxu0 %vm27_vm2, %v22_v8 }
  0xde   :  { %v97_v10 = vpop.f32.mrb[0].mxu0 }
  0xdf   :  { %v101_v11 = vadd.f32 %v97_v10, %v21_v9  ;;  %v149_v12 = vpop.f32.mrb[1].mxu0 }
  0xe1   :  { %103 = vst.msk [vmem:[#allocation2] sm:$0xff] %vm19_vm0, %v101_v11 }
  0xe8   :  { %v107_v14 = vld [vmem:[#allocation2] sm:$0xff] }
  0xe9   :  { %v115_v15 = vadd.f32 %v133_v13, %v107_v14 }
  0xeb   :  { %v116_v16 = vmax.f32 %v115_v15, 0.0 }
  0xed   :  { %117 = vst.msk [vmem:[#allocation2] sm:$0xff] %vm19_vm0, %v116_v16 }
  0xee   :  { %171 = shalt.err (!%p168_p4)
}
  0xef   :  { %s172_s27 = scalar_lea.hbm %s244_s3, 128 }
  0xf0   :  { %p173_p5 = scmp.ne.s32.totalorder %s244_s3, %s172_s27  ;;  %p176_p6 = scmp.lt.u32.totalorder %s172_s27, %s244_s3 }
  0xf2   :  { %p178_p7 = pnand %p176_p6, %p173_p5 }
  0xf4   :  { %181 = shalt.err (!%p178_p7)
}
  0xf5   :  { %127 = dma.vmem_to_hbm [thread:$0]  %s125_s24, 128, %s244_s3, [#allocation3]  }
  0xf6   :  { %182 = dma.done.wait [#allocation3], 128  }
  0xf7   :  { %183 = vsyncadd [#allocation3], 4294967168 }
  0xf8   :  { %131 = vsyncpa [#allocation3], 1 }

</bundles_post_ra>
